<compile_context>
chip_gen: v6e
topology: v6e:2x2x1
jax: 0.10.0
libtpu: 0.0.40
codegen_flags: <defaults>
</compile_context>

<pallas_src>
import jax
import jax.numpy as jnp
import numpy as np
from jax.experimental import pallas as pl
from jax.experimental.pallas import tpu as pltpu


def fc0_kernel(x_ref, pw_ref, b_ref, out_ref):
    """One fused tile: (pool+flatten+fc1[:, :10]) matmul -> square -> log_softmax.

    Block shapes:
      x_ref  : (TB, F)   flattened NCHW image tile (F = C*H*W)
      pw_ref : (F, 10)   folded pooling/flatten/fc1[:10] operator (constant)
      b_ref  : (1, 10)   fc1.bias[:10]
      out_ref: (TB, 10)
    """
    logits = jnp.dot(x_ref[...], pw_ref[...],
                     preferred_element_type=jnp.float32) + b_ref[...]   # (TB, 10)
    sq = logits * logits

    # Numerically stable log_softmax over dim 1 (per-row only: safe for the
    # masked garbage rows of a partial edge block).
    m = jnp.max(sq, axis=-1, keepdims=True)
    lse = m + jnp.log(jnp.sum(jnp.exp(sq - m), axis=-1, keepdims=True))
    out_ref[...] = sq - lse


def _pool_flatten_operator(C, H, W):
    """Constant (C*H*W, 16) matrix implementing avg_pool2d(6) + CHW flatten."""
    Ho, Wo = H // 6, W // 6
    assert C * Ho * Wo == 16, "fc1 expects 16 pooled features"
    pf = np.zeros((C * H * W, C * Ho * Wo), np.float32)
    for c in range(C):
        for u in range(Ho * 6):
            for v in range(Wo * 6):
                src = (c * H + u) * W + v
                dst = (c * Ho + u // 6) * Wo + v // 6
                pf[src, dst] = 1.0 / 36.0
    return jnp.asarray(pf)


def _round_up(n, m):
    return (n + m - 1) // m * m


def _choose_tb(B):
    """Batch tile: big enough to stream HBM efficiently (target 512–1024 rows),
    small enough that the grid has >=2 parallel steps (v7x megacore) and the
    double-buffered tiles fit every generation's default scoped VMEM."""
    TB_MAX = 1024                      # ~3.5 MiB/buffer at F=784 -> ~8-9 MiB total
    if B <= 8:
        return 8                       # single (masked) edge block
    half = -(-B // 2)                  # ceil(B / 2): keep >=2 grid steps
    return min(TB_MAX, _round_up(half, 8))


def classical_fc0_forward(x_nchw, params):
    """x_nchw: (B, C, H, W) float32; params = (fc1.weight (16,16), fc1.bias (16,))."""
    w, b = params
    B, C, H, W = x_nchw.shape
    F = C * H * W

    # Fold avg_pool2d(6) + flatten + fc1[:, :10] into one (F, 10) operator.
    pf = _pool_flatten_operator(C, H, W)                       # (F, 16)
    w10 = jnp.transpose(w[:10, :]).astype(jnp.float32)         # (16, 10)
    pw = jnp.dot(pf, w10).astype(jnp.float32)                  # (F, 10)
    b10 = b[:10].reshape(1, 10).astype(jnp.float32)

    x2d = x_nchw.reshape(B, F).astype(jnp.float32)             # CHW flatten, lane-dense rows

    TB = _choose_tb(B)
    grid = (pl.cdiv(B, TB),)                                   # partial edge block is masked
                                                               # (no whole-array jnp.pad copy)

    out = pl.pallas_call(
        fc0_kernel,
        out_shape=jax.ShapeDtypeStruct((B, 10), jnp.float32),
        grid=grid,
        in_specs=[
            pl.BlockSpec((TB, F), lambda i: (i, 0)),           # streamed batch tile of images
            pl.BlockSpec((F, 10), lambda i: (0, 0)),           # VMEM-resident folded operator
            pl.BlockSpec((1, 10), lambda i: (0, 0)),           # VMEM-resident bias
        ],
        out_specs=pl.BlockSpec((TB, 10), lambda i: (i, 0)),    # keep 10-wide: writes are tiny
        compiler_params=pltpu.CompilerParams(
            dimension_semantics=("parallel",),                 # shard batch tiles across TCs
        ),
        cost_estimate=pl.CostEstimate(
            flops=2 * B * F * 10,
            transcendentals=B * 10,
            bytes_accessed=B * F * 4 + F * 10 * 4 + B * 10 * 4,
        ),
    )(x2d, pw, b10)

    return jnp.squeeze(out)                                    # matches output.squeeze()


def torch_reference(x_nchw, params):
    """Pure-JAX reference mirroring the PyTorch forward."""
    w, b = params
    B, C, H, W = x_nchw.shape
    Ho, Wo = H // 6, W // 6
    p = x_nchw[:, :, :Ho * 6, :Wo * 6].reshape(B, C, Ho, 6, Wo, 6).mean(axis=(3, 5))
    flat = p.reshape(B, 16)
    y = flat @ w.T + b
    y = y[:, :10]
    y = y * y
    return jnp.squeeze(jax.nn.log_softmax(y, axis=1))


if __name__ == "__main__":
    key = jax.random.PRNGKey(0)
    wkey, bkey, xkey = jax.random.split(key, 3)
    # nn.Linear(16, 16) parameters.
    w = jax.random.normal(wkey, (16, 16), jnp.float32) * 0.25
    b = jax.random.normal(bkey, (16,), jnp.float32) * 0.25
    params = (w, b)
    # MNIST-style input: avg_pool2d(., 6) -> (B, 1, 4, 4) -> view(B, 16).
    x = jax.random.normal(xkey, (2, 1, 28, 28), jnp.float32)

    out = jax.jit(classical_fc0_forward)(x, params)
    out = jax.block_until_ready(out)

    ref = torch_reference(x, params)
    np.testing.assert_allclose(np.asarray(out), np.asarray(ref), rtol=1e-3, atol=1e-3)
    assert out.shape == (2, 10)
    print("KERNEL_OK")
</pallas_src>

<mosaic_0001>
module attributes {stable_mosaic.version = 11 : i64} {
  func.func @fc0_kernel(%arg0: i32, %arg1: memref<8x784xf32, #tpu.memory_space<vmem>>, %arg2: memref<784x10xf32, #tpu.memory_space<vmem>>, %arg3: memref<1x10xf32, #tpu.memory_space<vmem>>, %arg4: memref<8x10xf32, #tpu.memory_space<vmem>>) attributes {dimension_semantics = [#tpu.dimension_semantics<parallel>], iteration_bounds = array<i64: 1>, scalar_prefetch = 0 : i64, scratch_operands = 0 : i64, tpu.core_type = #tpu.core_type<tc>, window_params = [{transform_indices = @transform_0, window_bounds = array<i64: 8, 784>}, {pipeline_mode = #tpu.pipeline_mode<synchronous>, transform_indices = @transform_1, window_bounds = array<i64: 784, 10>}, {pipeline_mode = #tpu.pipeline_mode<synchronous>, transform_indices = @transform_2, window_bounds = array<i64: 1, 10>}, {transform_indices = @transform_3, window_bounds = array<i64: 8, 10>}]} {
    %c0 = arith.constant 0 : index
    %c0_0 = arith.constant 0 : index
    %0 = vector.load %arg1[%c0, %c0_0] : memref<8x784xf32, #tpu.memory_space<vmem>>, vector<8x784xf32>
    %c0_1 = arith.constant 0 : index
    %c0_2 = arith.constant 0 : index
    %1 = vector.load %arg2[%c0_1, %c0_2] : memref<784x10xf32, #tpu.memory_space<vmem>>, vector<784x10xf32>
    %cst = arith.constant dense<0.000000e+00> : vector<8x10xf32>
    %2 = tpu.matmul %0, %1, %cst {dimension_numbers = #tpu.dot_dimension_numbers<[1], [0], [0], [1], [0, 0, 1, 1], [], []>} : vector<8x784xf32>, vector<784x10xf32>, vector<8x10xf32> -> vector<8x10xf32>
    %c0_3 = arith.constant 0 : index
    %c0_4 = arith.constant 0 : index
    %3 = vector.load %arg3[%c0_3, %c0_4] : memref<1x10xf32, #tpu.memory_space<vmem>>, vector<1x10xf32>
    %4 = vector.broadcast %3 : vector<1x10xf32> to vector<8x10xf32>
    %5 = arith.addf %2, %4 : vector<8x10xf32>
    %6 = arith.mulf %5, %5 : vector<8x10xf32>
    %cst_5 = arith.constant dense<0xFF800000> : vector<8xf32>
    %7 = vector.multi_reduction <maximumf>, %6, %cst_5 [1] : vector<8x10xf32> to vector<8xf32>
    %8 = vector.shape_cast %7 : vector<8xf32> to vector<8x1xf32>
    %9 = vector.broadcast %8 : vector<8x1xf32> to vector<8x10xf32>
    %10 = arith.subf %6, %9 : vector<8x10xf32>
    %11 = math.exp %10 : vector<8x10xf32>
    %cst_6 = arith.constant dense<0.000000e+00> : vector<8xf32>
    %12 = vector.multi_reduction <add>, %11, %cst_6 [1] : vector<8x10xf32> to vector<8xf32>
    %13 = vector.shape_cast %12 : vector<8xf32> to vector<8x1xf32>
    %14 = math.log %13 : vector<8x1xf32>
    %15 = arith.addf %8, %14 : vector<8x1xf32>
    %16 = vector.broadcast %15 : vector<8x1xf32> to vector<8x10xf32>
    %17 = arith.subf %6, %16 : vector<8x10xf32>
    %c0_7 = arith.constant 0 : index
    %c0_8 = arith.constant 0 : index
    %18 = vector.load %arg4[%c0_7, %c0_8] : memref<8x10xf32, #tpu.memory_space<vmem>>, vector<8x10xf32>
    tpu.vector_store %arg4[%c0_7, %c0_8], %17 {strides = array<i32>} : memref<8x10xf32, #tpu.memory_space<vmem>>, vector<8x10xf32>,
    return
  }
  func.func @transform_0(%arg0: i32) -> (i32, i32) {
    %c0_i32 = arith.constant 0 : i32
    %c0_i32_0 = arith.constant 0 : i32
    return %arg0, %c0_i32 : i32, i32
  }
  func.func @transform_1(%arg0: i32) -> (i32, i32) {
    %c0_i32 = arith.constant 0 : i32
    %c0_i32_0 = arith.constant 0 : i32
    %c0_i32_1 = arith.constant 0 : i32
    return %c0_i32, %c0_i32_0 : i32, i32
  }
  func.func @transform_2(%arg0: i32) -> (i32, i32) {
    %c0_i32 = arith.constant 0 : i32
    %c0_i32_0 = arith.constant 0 : i32
    %c0_i32_1 = arith.constant 0 : i32
    return %c0_i32, %c0_i32_0 : i32, i32
  }
  func.func @transform_3(%arg0: i32) -> (i32, i32) {
    %c0_i32 = arith.constant 0 : i32
    %c0_i32_0 = arith.constant 0 : i32
    return %arg0, %c0_i32 : i32, i32
  }
}

</mosaic_0001>

<bundles_post_ra>
// kernel: classical_fc0_forward.1
= control target key start
LH: loop header
LB: loop body
LE: loop exit
PB: predicated region body
PF: predicated region fallthrough
CT: control target
= control target key end

     0   :  { %8 = vsyncpa [#allocation3], 0  ;;  %v689_v29 = vmov 1983009808   ;;  %v143_v31 = vlaneseq  ;;  %vm691_vm0 = vmmov 0   ;;  %vm213_vm1 = vcmask 130048   ;;  %s1060_s0 = inlined_call_operand.vmem [shape: f32[2,784], index: 0, kind: input, shape index: {}]   ;;  %s1061_s1 = inlined_call_operand.vmem [shape: f32[784,10], index: 1, kind: input, shape index: {}]   ;;  %s1062_s2 = inlined_call_operand.vmem [shape: f32[1,10], index: 2, kind: input, shape index: {}]   ;;  %s1063_s3 = inlined_call_operand.hbm [shape: f32[2,10], index: 3, kind: output, shape index: {}]  }
   0x1   :  { %v54_v0 = vld [vmem:[%s1061_s1 + $0xf8] sm:$0xff]  ;;  %v53_v2 = vld [vmem:[%s1061_s1 + $0xf0] sm:$0xff]  ;;  %v52_v6 = vld [vmem:[%s1061_s1 + $0xe8] sm:$0xff]  ;;  %v141_v30 = vunpack.c.l.s4 %v689_v29  ;;  %v690_v29 = vmov 0.0   ;;  %vm497_vm2 = vcmask 80896  }
   0x2   :  { %v38_v1 = vld [vmem:[%s1061_s1 + $0x78] sm:$0xff]  ;;  %530 = vmatprep.subr.mxu0 %v54_v0  ;;  %v37_v4 = vld [vmem:[%s1061_s1 + $0x70] sm:$0xff]  ;;  %v36_v8 = vld [vmem:[%s1061_s1 + $0x68] sm:$0xff]  ;;  %v144_v41 = vshrl.u32 %v143_v31, 7 }
   0x3   :  { %v86_v3 = vld [vmem:[%s1061_s1 + $0x1f8] sm:$0xff]  ;;  %531 = vmatpush3.msra.mxu0 %v38_v1  ;;  %v85_v7 = vld [vmem:[%s1061_s1 + $0x1f0] sm:$0xff]  ;;  %v51_v10 = vld [vmem:[%s1061_s1 + $0xe0] sm:$0xff]  ;;  %v142_v40 = vunpack.c.0.s8 %v141_v30 }
   0x4   :  { %565 = vmatprep.subr.mxu1 %v86_v3  ;;  %v70_v5 = vld [vmem:[%s1061_s1 + $0x178] sm:$0xff]  ;;  %532 = vmatprep.subr.mxu0 %v53_v2  ;;  %v69_v9 = vld [vmem:[%s1061_s1 + $0x170] sm:$0xff]  ;;  %v84_v11 = vld [vmem:[%s1061_s1 + $0x1e8] sm:$0xff] }
   0x5   :  { %566 = vmatpush3.msra.mxu1 %v70_v5  ;;  %533 = vmatpush3.msra.mxu0 %v37_v4  ;;  %v68_v12 = vld [vmem:[%s1061_s1 + $0x168] sm:$0xff]  ;;  %v35_v13 = vld [vmem:[%s1061_s1 + $0x60] sm:$0xff]  ;;  %v50_v15 = vld [vmem:[%s1061_s1 + $0xd8] sm:$0xff]  ;;  %v859_v53 = vsub.s32 %v142_v40, %v144_v41 }
   0x6   :  { %567 = vmatprep.subr.mxu1 %v85_v7  ;;  %534 = vmatprep.subr.mxu0 %v52_v6  ;;  %v83_v14 = vld [vmem:[%s1061_s1 + $0x1e0] sm:$0xff]  ;;  %v34_v17 = vld [vmem:[%s1061_s1 + $0x58] sm:$0xff]  ;;  %v49_v19 = vld [vmem:[%s1061_s1 + $0xd0] sm:$0xff] }
   0x7   :  { %568 = vmatpush3.msra.mxu1 %v69_v9  ;;  %535 = vmatpush3.msra.mxu0 %v36_v8  ;;  %v67_v16 = vld [vmem:[%s1061_s1 + $0x160] sm:$0xff]  ;;  %v82_v18 = vld [vmem:[%s1061_s1 + $0x1d8] sm:$0xff]  ;;  %v33_v21 = vld [vmem:[%s1061_s1 + $0x50] sm:$0xff] }
   0x8   :  { %569 = vmatprep.subr.mxu1 %v84_v11  ;;  %536 = vmatprep.subr.mxu0 %v51_v10  ;;  %v66_v20 = vld [vmem:[%s1061_s1 + $0x158] sm:$0xff]  ;;  %v81_v22 = vld [vmem:[%s1061_s1 + $0x1d0] sm:$0xff]  ;;  %v48_v23 = vld [vmem:[%s1061_s1 + $0xc8] sm:$0xff] }
   0x9   :  { %570 = vmatpush3.msra.mxu1 %v68_v12  ;;  %537 = vmatpush3.msra.mxu0 %v35_v13  ;;  %v65_v24 = vld [vmem:[%s1061_s1 + $0x150] sm:$0xff]  ;;  %v32_v25 = vld [vmem:[%s1061_s1 + $0x48] sm:$0xff]  ;;  %v47_v27 = vld [vmem:[%s1061_s1 + $0xc0] sm:$0xff] }
   0xa   :  { %571 = vmatprep.subr.mxu1 %v83_v14  ;;  %538 = vmatprep.subr.mxu0 %v50_v15  ;;  %v80_v26 = vld [vmem:[%s1061_s1 + $0x1c8] sm:$0xff]  ;;  %v31_v32 = vld [vmem:[%s1061_s1 + $0x40] sm:$0xff]  ;;  %v46_v34 = vld [vmem:[%s1061_s1 + $0xb8] sm:$0xff] }
   0xb   :  { %572 = vmatpush3.msra.mxu1 %v67_v16  ;;  %539 = vmatpush3.msra.mxu0 %v34_v17  ;;  %v64_v28 = vld [vmem:[%s1061_s1 + $0x148] sm:$0xff]  ;;  %v79_v33 = vld [vmem:[%s1061_s1 + $0x1c0] sm:$0xff]  ;;  %v30_v36 = vld [vmem:[%s1061_s1 + $0x38] sm:$0xff] }
   0xc   :  { %573 = vmatprep.subr.mxu1 %v82_v18  ;;  %540 = vmatprep.subr.mxu0 %v49_v19  ;;  %v63_v35 = vld [vmem:[%s1061_s1 + $0x140] sm:$0xff]  ;;  %v78_v37 = vld [vmem:[%s1061_s1 + $0x1b8] sm:$0xff]  ;;  %v45_v38 = vld [vmem:[%s1061_s1 + $0xb0] sm:$0xff] }
   0xd   :  { %574 = vmatpush3.msra.mxu1 %v66_v20  ;;  %541 = vmatpush3.msra.mxu0 %v33_v21  ;;  %v62_v39 = vld [vmem:[%s1061_s1 + $0x138] sm:$0xff]  ;;  %v29_v42 = vld [vmem:[%s1061_s1 + $0x30] sm:$0xff]  ;;  %v44_v43 = vld [vmem:[%s1061_s1 + $0xa8] sm:$0xff] }
   0xe   :  { %575 = vmatprep.subr.mxu1 %v81_v22  ;;  %542 = vmatprep.subr.mxu0 %v48_v23  ;;  %v77_v44 = vld [vmem:[%s1061_s1 + $0x1b0] sm:$0xff]  ;;  %v28_v45 = vld [vmem:[%s1061_s1 + $0x28] sm:$0xff]  ;;  %v43_v47 = vld [vmem:[%s1061_s1 + $0xa0] sm:$0xff] }
   0xf   :  { %576 = vmatpush3.msra.mxu1 %v65_v24  ;;  %543 = vmatpush3.msra.mxu0 %v32_v25  ;;  %v61_v46 = vld [vmem:[%s1061_s1 + $0x130] sm:$0xff]  ;;  %v76_v48 = vld [vmem:[%s1061_s1 + $0x1a8] sm:$0xff]  ;;  %v27_v49 = vld [vmem:[%s1061_s1 + $0x20] sm:$0xff] }
  0x10   :  { %577 = vmatprep.subr.mxu1 %v80_v26  ;;  %544 = vmatprep.subr.mxu0 %v47_v27  ;;  %v60_v50 = vld [vmem:[%s1061_s1 + $0x128] sm:$0xff]  ;;  %v42_v51 = vld [vmem:[%s1061_s1 + $0x98] sm:$0xff]  ;;  %v75_v52 = vld [vmem:[%s1061_s1 + $0x1a0] sm:$0xff] }
  0x11   :  { %578 = vmatpush3.msra.mxu1 %v64_v28  ;;  %545 = vmatpush3.msra.mxu0 %v31_v32  ;;  %v59_v54 = vld [vmem:[%s1061_s1 + $0x120] sm:$0xff]  ;;  %v653_v56 = vld [vmem:[%s1060_s0 + $0x1c] ss:$14 sps:$4 sm:$0xff]   ;;  %v41_v58 = vld [vmem:[%s1061_s1 + $0x90] sm:$0xff] }
  0x12   :  { %579 = vmatprep.subr.mxu1 %v79_v33  ;;  %546 = vmatprep.subr.mxu0 %v46_v34  ;;  %v651_v55 = vld [vmem:[%s1060_s0] ss:$14 sps:$4 sm:$0xff]   ;;  %v26_v57 = vld [vmem:[%s1061_s1 + $0x18] sm:$0xff]  ;;  %v160_v62 = vrot.slane %v653_v56, %v859_v53  ;;  %v655_v63 = vld [vmem:[%s1060_s0 + $0x4] ss:$14 sps:$4 sm:$0xff]  }
  0x13   :  { %580 = vmatpush3.msra.mxu1 %v63_v35  ;;  %547 = vmatpush3.msra.mxu0 %v30_v36  ;;  %v74_v59 = vld [vmem:[%s1061_s1 + $0x198] sm:$0xff]  ;;  %v146_v61 = vrot.slane %v651_v55, %v859_v53  ;;  %v656_v0 = vld [vmem:[%s1060_s0 + $0x20] ss:$14 sps:$4 sm:$0xff]   ;;  %v153_v8 = vrot.slane %v655_v63, %v859_v53  ;;  %v660_v26 = vld [vmem:[%s1060_s0 + $0x24] ss:$14 sps:$4 sm:$0xff]  }
  0x14   :  { %581 = vmatprep.subr.mxu1 %v78_v37  ;;  %548 = vmatprep.subr.mxu0 %v45_v38  ;;  %v58_v60 = vld [vmem:[%s1061_s1 + $0x118] sm:$0xff]  ;;  %v25_v1 = vld [vmem:[%s1061_s1 + $0x10] sm:$0xff]  ;;  %v40_v3 = vld [vmem:[%s1061_s1 + $0x88] sm:$0xff]  ;;  %v167_v9 = vrot.slane %v656_v0, %v859_v53  ;;  %v965_v32 = vrot.slane %v660_v26, %v859_v53 }
  0x15   :  { %582 = vmatpush3.msra.mxu1 %v62_v39  ;;  %549 = vmatpush3.msra.mxu0 %v29_v42  ;;  %v73_v2 = vld [vmem:[%s1061_s1 + $0x190] sm:$0xff]  ;;  %v24_v5 = vld [vmem:[%s1061_s1 + $0x8] sm:$0xff]  ;;  %v169_v7 = vcombine.high %v146_v61, %v160_v62  ;;  %v39_v10 = vld [vmem:[%s1061_s1 + $0x80] sm:$0xff]  ;;  %v168_v13 = vcombine.low %v146_v61, %v160_v62 }
  0x16   :  { %583 = vmatprep.subr.mxu1 %v77_v44  ;;  %550 = vmatprep.subr.mxu0 %v44_v43  ;;  %v57_v4 = vld [vmem:[%s1061_s1 + $0x110] sm:$0xff]  ;;  %v72_v6 = vld [vmem:[%s1061_s1 + $0x188] sm:$0xff]  ;;  %v23_v11 = vld [vmem:[%s1061_s1] sm:$0xff]  ;;  %v171_v17 = vcombine.high %v153_v8, %v167_v9  ;;  %v170_v19 = vcombine.low %v153_v8, %v167_v9 }
  0x17   :  { %584 = vmatpush3.msra.mxu1 %v61_v46  ;;  %551 = vmatpush3.msra.mxu0 %v28_v45  ;;  %v56_v12 = vld [vmem:[%s1061_s1 + $0x108] sm:$0xff]  ;;  %v71_v14 = vld [vmem:[%s1061_s1 + $0x180] sm:$0xff]  ;;  %v118_v15 = vld [vmem:[%s1061_s1 + $0x2f8] sm:$0xff] }
  0x18   :  { %585 = vmatprep.subr.mxu1 %v76_v48  ;;  %552 = vmatprep.subr.mxu0 %v43_v47  ;;  %v55_v16 = vld [vmem:[%s1061_s1 + $0x100] sm:$0xff]  ;;  %v102_v18 = vld [vmem:[%s1061_s1 + $0x278] sm:$0xff]  ;;  %v117_v20 = vld [vmem:[%s1061_s1 + $0x2f0] sm:$0xff] }
  0x19   :  { %586 = vmatpush3.msra.mxu1 %v60_v50  ;;  %553 = vmatpush3.msra.mxu0 %v27_v49  ;;  %v101_v21 = vld [vmem:[%s1061_s1 + $0x270] sm:$0xff]  ;;  %v116_v22 = vld [vmem:[%s1061_s1 + $0x2e8] sm:$0xff]  ;;  %v115_v24 = vld [vmem:[%s1061_s1 + $0x2e0] sm:$0xff] }
  0x1a   :  { %587 = vmatprep.subr.mxu1 %v75_v52  ;;  %554 = vmatprep.subr.mxu0 %v42_v51  ;;  %v100_v23 = vld [vmem:[%s1061_s1 + $0x268] sm:$0xff]  ;;  %v99_v30 = vld [vmem:[%s1061_s1 + $0x260] sm:$0xff]  ;;  %v114_v35 = vld [vmem:[%s1061_s1 + $0x2d8] sm:$0xff] }
  0x1b   :  { %588 = vmatpush3.msra.mxu1 %v59_v54  ;;  %555 = vmatpush3.msra.mxu0 %v26_v57  ;;  %v657_v25 = vld [vmem:[%s1060_s0 + $0x8] ss:$14 sps:$4 sm:$0xff]   ;;  %v659_v27 = vld [vmem:[%s1060_s0 + $0xc] ss:$14 sps:$4 sm:$0x33]   ;;  %v119_v34 = vld [vmem:[%s1061_s1 + $0x300] sm:$0xff] }
  0x1c   :  { %589 = vmatprep.subr.mxu1 %v74_v59  ;;  %556 = vmatprep.subr.mxu0 %v41_v58  ;;  %v662_v28 = vld [vmem:[%s1060_s0 + $0x28] ss:$14 sps:$4 sm:$0x33]   ;;  %v962_v31 = vrot.slane %v657_v25, %v859_v53  ;;  %v189_v36 = vrot.slane %v659_v27, %v859_v53  ;;  %v98_v38 = vld [vmem:[%s1061_s1 + $0x258] sm:$0xff]  ;;  %v111_v45 = vld [vmem:[%s1061_s1 + $0x2c0] sm:$0xff] }
  0x1d   :  { %590 = vmatpush3.msra.mxu1 %v58_v60  ;;  %557 = vmatpush3.msra.mxu0 %v25_v1  ;;  %v120_v33 = vld [vmem:[%s1061_s1 + $0x308] sm:$0xff]  ;;  %v203_v37 = vrot.slane %v662_v28, %v859_v53  ;;  %v113_v40 = vld [vmem:[%s1061_s1 + $0x2d0] sm:$0xff]  ;;  %v95_v46 = vld [vmem:[%s1061_s1 + $0x240] sm:$0xff] }
  0x1e   :  { %591 = vmatprep.subr.mxu1 %v73_v2  ;;  %558 = vmatprep.subr.mxu0 %v40_v3  ;;  %v205_v39 = vcombine.high %v962_v31, %v965_v32  ;;  %v97_v42 = vld [vmem:[%s1061_s1 + $0x250] sm:$0xff]  ;;  %v112_v43 = vld [vmem:[%s1061_s1 + $0x2c8] sm:$0xff]  ;;  %v110_v47 = vld [vmem:[%s1061_s1 + $0x2b8] sm:$0xff]  ;;  %v204_v63 = vcombine.low %v962_v31, %v965_v32 }
  0x1f   :  { %592 = vmatpush3.msra.mxu1 %v57_v4  ;;  %559 = vmatpush3.msra.mxu0 %v24_v5  ;;  %v206_v41 = vcombine.low %v189_v36, %v203_v37  ;;  %v96_v44 = vld [vmem:[%s1061_s1 + $0x248] sm:$0xff]  ;;  %v94_v48 = vld [vmem:[%s1061_s1 + $0x238] sm:$0xff]  ;;  %v109_v49 = vld [vmem:[%s1061_s1 + $0x2b0] sm:$0xff] }
  0x20   :  { %593 = vmatprep.subr.mxu1 %v72_v6  ;;  %560 = vmatprep.subr.mxu0 %v39_v10  ;;  %v93_v50 = vld [vmem:[%s1061_s1 + $0x230] sm:$0xff]  ;;  %v108_v51 = vld [vmem:[%s1061_s1 + $0x2a8] sm:$0xff]  ;;  %v107_v53 = vld [vmem:[%s1061_s1 + $0x2a0] sm:$0xff] }
  0x21   :  { %280 = vmatprep.mubr.f32.mxu0 %v169_v7  ;;  %561 = vmatpush3.msra.mxu0 %v23_v11  ;;  %v92_v52 = vld [vmem:[%s1061_s1 + $0x228] sm:$0xff]  ;;  %v91_v54 = vld [vmem:[%s1061_s1 + $0x220] sm:$0xff]  ;;  %v106_v55 = vld [vmem:[%s1061_s1 + $0x298] sm:$0xff] }
  0x22   :  { %594 = vmatpush3.msra.mxu1 %v56_v12  ;;  %281 = vmatmul.mubr.f32.vlgmr.msra.gmra.mxu0 %v168_v13  ;;  %v90_v56 = vld [vmem:[%s1061_s1 + $0x218] sm:$0xff]  ;;  %v105_v57 = vld [vmem:[%s1061_s1 + $0x290] sm:$0xff]  ;;  %v104_v59 = vld [vmem:[%s1061_s1 + $0x288] sm:$0xff] }
  0x23   :  { %595 = vmatprep.subr.mxu1 %v71_v14  ;;  %600 = vmatprep.subr.mxu0 %v118_v15  ;;  %v89_v58 = vld [vmem:[%s1061_s1 + $0x210] sm:$0xff]  ;;  %v88_v60 = vld [vmem:[%s1061_s1 + $0x208] sm:$0xff]  ;;  %v103_v61 = vld [vmem:[%s1061_s1 + $0x280] sm:$0xff] }
  0x24   :  { %596 = vmatpush3.msra.mxu1 %v55_v16  ;;  %350 = vmatprep.mubr.f32.mxu1 %v171_v17  ;;  %v87_v62 = vld [vmem:[%s1061_s1 + $0x200] sm:$0xff] }
  0x25   :  { %601 = vmatpush3.msra.mxu0 %v102_v18  ;;  %351 = vmatmul.mubr.f32.vlgmr.msra.gmra.mxu1 %v170_v19  ;;  %v528_v7 = vld [vmem:[%s1062_s2] ss:$0 sm:$0xff] }
  0x26   :  { %602 = vmatprep.subr.mxu0 %v117_v20  ;;  %638 = vmatprep.subr.mxu1 %v690_v29 }
  0x27   :  { %603 = vmatpush3.msra.mxu0 %v101_v21  ;;  %642 = vmatprep.mubr.msk.f32.mxu1 %vm691_vm0, %v690_v29 }
  0x28   :  { %604 = vmatprep.subr.mxu0 %v116_v22  ;;  %639 = vmatpush3.msra.mxu1 %v120_v33 }
  0x29   :  { %605 = vmatpush3.msra.mxu0 %v100_v23  ;;  %640 = vmatprep.subr.mxu1 %v690_v29 }
  0x2a   :  { %606 = vmatprep.subr.mxu0 %v115_v24  ;;  %641 = vmatpush3.msra.mxu1 %v119_v34 }
  0x2b   :  { %607 = vmatpush3.msra.mxu0 %v99_v30  ;;  %420 = vmatprep.mubr.f32.mxu0 %v205_v39 }
  0x2c   :  { %608 = vmatprep.subr.mxu0 %v114_v35  ;;  %643 = vmatmul.mubr.msk.f32.vlgmr.msra.gmra.mxu1 %vm213_vm1, %v206_v41 }
  0x2d   :  { %609 = vmatpush3.msra.mxu0 %v98_v38 }
  0x2e   :  { %610 = vmatprep.subr.mxu0 %v113_v40 }
  0x2f   :  { %611 = vmatpush3.msra.mxu0 %v97_v42 }
  0x30   :  { %612 = vmatprep.subr.mxu0 %v112_v43 }
  0x31   :  { %613 = vmatpush3.msra.mxu0 %v96_v44 }
  0x32   :  { %614 = vmatprep.subr.mxu0 %v111_v45 }
  0x33   :  { %615 = vmatpush3.msra.mxu0 %v95_v46 }
  0x34   :  { %616 = vmatprep.subr.mxu0 %v110_v47 }
  0x35   :  { %617 = vmatpush3.msra.mxu0 %v94_v48 }
  0x36   :  { %618 = vmatprep.subr.mxu0 %v109_v49 }
  0x37   :  { %619 = vmatpush3.msra.mxu0 %v93_v50 }
  0x38   :  { %620 = vmatprep.subr.mxu0 %v108_v51 }
  0x39   :  { %621 = vmatpush3.msra.mxu0 %v92_v52 }
  0x3a   :  { %622 = vmatprep.subr.mxu0 %v107_v53 }
  0x3b   :  { %623 = vmatpush3.msra.mxu0 %v91_v54 }
  0x3c   :  { %624 = vmatprep.subr.mxu0 %v106_v55 }
  0x3d   :  { %625 = vmatpush3.msra.mxu0 %v90_v56 }
  0x3e   :  { %626 = vmatprep.subr.mxu0 %v105_v57 }
  0x3f   :  { %627 = vmatpush3.msra.mxu0 %v89_v58 }
  0x40   :  { %628 = vmatprep.subr.mxu0 %v104_v59 }
  0x41   :  { %629 = vmatpush3.msra.mxu0 %v88_v60 }
  0x42   :  { %630 = vmatprep.subr.mxu0 %v103_v61 }
  0x43   :  { %631 = vmatpush3.msra.mxu0 %v87_v62 }
  0x44   :  { %421 = vmatmul.mubr.f32.vlgmr.msra.gmra.mxu0 %v204_v63 }
  0xe2   :  { %v562_v4 = vpop.f32.mrf.mxu0 }
  0xe4   :  { %v563_v5 = vpop.f32.mrf.mxu0 }
  0xe5   :  { %v597_v0 = vpop.f32.mrf.mxu1  ;;  %v564_v6 = vadd.f32 %v563_v5, %v562_v4 }
  0xe7   :  { %v598_v1 = vpop.f32.mrf.mxu1  ;;  %v283_v8 = vadd.f32 %v564_v6, %v528_v7 }
  0xe8   :  { %v599_v9 = vadd.f32 %v598_v1, %v597_v0 }
  0xea   :  { %v353_v12 = vadd.f32 %v599_v9, %v283_v8 }
  0xec   :  { %v492_v2 = vpop.f32.mrf.mxu1 }
  0xee   :  { %v644_v3 = vpop.f32.mrf.mxu1 }
 0x104   :  { %v632_v10 = vpop.f32.mrf.mxu0 }
 0x106   :  { %v633_v11 = vpop.f32.mrf.mxu0 }
 0x107   :  { %v634_v13 = vadd.f32 %v633_v11, %v632_v10 }
 0x109   :  { %v423_v14 = vadd.f32 %v634_v13, %v353_v12 }
 0x10b   :  { %v493_v15 = vadd.f32 %v492_v2, %v423_v14 }
 0x10d   :  { %v496_v16 = vmul.f32 %v493_v15, %v493_v15 }
 0x10f   :  { %v498_v17 = vsel %vm497_vm2, %v496_v16, -inf }
 0x110   :  { %499 = vmax.xlane.f32.xlu0 %v498_v17 }
 0x199   :  { %v500_v18 = vpop.xlane.xlu0 %499 }
 0x19a   :  { %v501_v19 = vsub.f32 %v496_v16, %v500_v18 }
 0x19c   :  { %v502_v20 = vmul.f32 1.442695, %v501_v19 }
 0x19e   :  { %663 = vpow2.f32 %v502_v20 }
 0x1ab   :  { %v664_v21 = vpop.eup %663 }
 0x1ac   :  { %v504_v22 = vsel %vm497_vm2, %v664_v21, 0.0 }
 0x1ad   :  { %505 = vadd.xlane.f32.xlu0 %v504_v22 }
 0x236   :  { %v506_v23 = vpop.xlane.xlu0 %505 }
 0x237   :  { %665 = vlog2.f32 %v506_v23 }
 0x244   :  { %v666_v24 = vpop.eup %665 }
 0x245   :  { %v508_v25 = vmul.f32 0.6931472, %v666_v24 }
 0x247   :  { %v509_v26 = vadd.f32 %v508_v25, %v500_v18 }
 0x249   :  { %v510_v27 = vsub.f32 %v496_v16, %v509_v26 }
 0x24b   :  { %511 = vst.msk [vmem:[#allocation2] sm:$0xff] %vm497_vm2, %v510_v27 }
 0x24c   :  { %516 = vsyncadd [#allocation3], 96  ;;  %s692_s1 = smov [#allocation2]  }
 0x24d   :  { %s517_s2 = sshll.u32 %s692_s1, 4  ;;  %s518_s2 = int_to_ptr.vmem [resolvable:$true] %s517_s2 }
 0x24e   :  { %s667_s8 = scalar_lea.vmem %s518_s2, 32  ;;  %s671_s9 = scalar_lea.vmem %s518_s2, 128 }
 0x24f   :  { %p668_p0 = scmp.ne.s32.totalorder %s518_s2, %s667_s8  ;;  %p672_p1 = scmp.lt.s32.totalorder %s518_s2, %s518_s2 }
 0x250   :  { %p673_p2 = scmp.lt.s32.totalorder %s671_s9, %s667_s8 }
 0x252   :  { %p674_p3 = por %p673_p2, %p672_p1 }
 0x254   :  { %p675_p4 = pnand %p674_p3, %p668_p0 }
 0x256   :  { %678 = shalt.err (!%p675_p4)
}
 0x257   :  { %s693_s10 = smov 32   ;;  %s694_s11 = smov 2  }
 0x258   :  { %523 = dma.vmem_to_hbm [thread:$0]  %s518_s2, 32, %s1063_s3, [#allocation3], %s693_s10, %s693_s10, %s694_s11  }
 0x259   :  { %687 = dma.done.wait [#allocation3], 128  }
 0x25a   :  { %688 = vsyncadd [#allocation3], 4294967168 }
 0x25b   :  { %527 = vsyncpa [#allocation3], 1 }

</bundles_post_ra>
